<compile_context>
chip_gen: v7x
topology: tpu7x:2x2x1
jax: 0.10.0
libtpu: 0.0.40
codegen_flags: <defaults>
</compile_context>

<pallas_src>
import functools

import jax
import jax.numpy as jnp
from jax.experimental import pallas as pl
from jax.experimental.pallas import tpu as pltpu

_LANES = 128


def _clamp_kernel(x_ref, o_ref, *, minval, maxval):
    # minval/maxval are static Python scalars (literals in the jaxpr), so the
    # kernel captures no traced constants.  Clamp is 2 VPU ops/element; the
    # kernel is purely HBM-bandwidth bound.
    # TODO(synk): largest remaining win is fusing this clamp with the adjacent
    # DoReFa quantize/round (or the producing conv epilogue) in one kernel; a
    # standalone elementwise clamp cannot beat fused-XLA's HBM roofline.
    o_ref[...] = jnp.clip(x_ref[...], minval, maxval).astype(o_ref.dtype)


def _sublane_multiple(dtype) -> int:
    # Packed-sublane tiling: 8 rows for 4-byte, 16 for 2-byte, 32 for 1-byte.
    itemsize = jnp.dtype(dtype).itemsize
    return {4: 8, 2: 16, 1: 32}.get(itemsize, 8)


def _round_up(n: int, m: int) -> int:
    return -(-n // m) * m


@functools.lru_cache(maxsize=None)
def _tpu_props():
    """Returns (multi_core, target_block_bytes) for the default device."""
    kind = ""
    try:
        kind = jax.devices()[0].device_kind.lower()
    except Exception:
        pass
    multi_core = ("v7" in kind) or ("7x" in kind)   # v7x: 2 TensorCores/chip
    small_vmem = "v5" in kind                       # v5e: 16 MiB scoped default
    # ~2 MiB blocks -> 8 MiB double-buffered in+out footprint (v5e-safe);
    # ~4 MiB blocks -> 16 MiB footprint, ~86% of HBM roofline (v6e/v7x).
    target_block_bytes = (2 << 20) if small_vmem else (4 << 20)
    return multi_core, target_block_bytes


def _run_tiled(x2d, lo, hi, donate, input_buffering):
    """Tiled clamp of a lane-dense (n_rows, 128) slab."""
    n_rows, lanes = x2d.shape
    itemsize = jnp.dtype(x2d.dtype).itemsize
    sub = _sublane_multiple(x2d.dtype)
    multi_core, target_block_bytes = _tpu_props()

    tile_rows_cap = max(sub, (target_block_bytes // (lanes * itemsize)) // sub * sub)
    if multi_core:
        # v7x: both TensorCores split the "parallel" axis.  Aim for >= 8 grid
        # steps (>= 2, ideally 4, blocks per core) so each core can pipeline.
        per_step = _round_up(pl.cdiv(n_rows, 8), sub)
        tile_rows = max(sub, min(tile_rows_cap, per_step))
    else:
        # v5e/v6e: single TensorCore -- splitting small tensors only adds
        # ~0.35 us/step overhead, so run one maximal block when it fits.
        tile_rows = max(sub, min(tile_rows_cap, _round_up(n_rows, sub)))

    grid = (pl.cdiv(n_rows, tile_rows),)
    block_bytes = tile_rows * lanes * itemsize
    # Footprint = 2 buffers x (in + out) x block = 4 x block; +50% headroom,
    # floored at 16 MiB, capped at the 32 MiB scoped default (v6e/v7x safe;
    # v5e has 128 MiB physical so an explicit 16-32 MiB request is fine too).
    vmem_limit = int(min(max(6 * block_bytes, 16 << 20), 32 << 20))

    if input_buffering and int(input_buffering) > 2:
        in_spec = pl.BlockSpec((tile_rows, lanes), lambda i: (i, 0),
                               pipeline_mode=pl.Buffered(int(input_buffering)))
    else:
        in_spec = pl.BlockSpec((tile_rows, lanes), lambda i: (i, 0))

    kernel = functools.partial(_clamp_kernel, minval=lo, maxval=hi)
    return pl.pallas_call(
        kernel,
        out_shape=jax.ShapeDtypeStruct((n_rows, lanes), x2d.dtype),
        grid_spec=pltpu.PrefetchScalarGridSpec(
            num_scalar_prefetch=0,
            grid=grid,
            in_specs=[in_spec],
            out_specs=pl.BlockSpec((tile_rows, lanes), lambda i: (i, 0)),
        ),
        input_output_aliases=({0: 0} if donate else {}),
        compiler_params=pltpu.CompilerParams(
            dimension_semantics=("parallel",),
            vmem_limit_bytes=vmem_limit),
    )(x2d)


def _run_single_block(x2d, lo, hi, donate):
    """Whole-array single-block clamp (ragged shapes; Mosaic masks the edges)."""
    rows, cols = x2d.shape
    kernel = functools.partial(_clamp_kernel, minval=lo, maxval=hi)
    return pl.pallas_call(
        kernel,
        out_shape=jax.ShapeDtypeStruct((rows, cols), x2d.dtype),
        grid_spec=pltpu.PrefetchScalarGridSpec(
            num_scalar_prefetch=0,
            grid=(1,),
            in_specs=[pl.BlockSpec((rows, cols), lambda i: (0, 0))],
            out_specs=pl.BlockSpec((rows, cols), lambda i: (0, 0)),
        ),
        input_output_aliases=({0: 0} if donate else {}),
        compiler_params=pltpu.CompilerParams(vmem_limit_bytes=16 << 20),
    )(x2d)


def clamper(x, minval, maxval, *, donate=False, input_buffering=2):
    """Forward of dorefa.Clamper: y = clip(x, minval, maxval).

    minval/maxval must be static Python numbers (constructor constants in the
    PyTorch module).  `donate=True` adds input_output_aliases={0:0}, which
    under jit with a dead/donated input reproduces clamp_'s in-place behaviour
    (halves live HBM footprint); left False by default because eager callers
    with a still-live input would pay an XLA protective copy instead.
    """
    orig_shape = x.shape
    dtype = x.dtype
    n_elem = x.size

    # Cast bounds to a matching *weak* Python scalar so integer tensors stay
    # integer (no f32 round trip / truncate-toward-zero mismatch vs torch).
    if jnp.issubdtype(dtype, jnp.integer):
        lo, hi = int(minval), int(maxval)
    else:
        lo, hi = float(minval), float(maxval)

    if n_elem == 0 or x.ndim == 0:
        return jnp.clip(x, lo, hi)

    itemsize = jnp.dtype(dtype).itemsize
    sub = _sublane_multiple(dtype)

    if n_elem % _LANES == 0:
        # Common conv-activation case: metadata-only reshape to (rows, 128).
        x2d = x.reshape(n_elem // _LANES, _LANES)
        out = _run_tiled(x2d, lo, hi, donate, input_buffering)
        return out.reshape(orig_shape)

    # numel not a multiple of 128 (rare).  No padding: either one full-array
    # block (Mosaic masks ragged lanes/sublanes) or prefix-kernel + tiny tail.
    if x.ndim >= 2:
        rows, cols = n_elem // orig_shape[-1], orig_shape[-1]
    else:
        rows, cols = 1, n_elem
    padded_vmem = _round_up(rows, sub) * _round_up(cols, _LANES) * itemsize
    if 2 * padded_vmem <= (8 << 20):
        out = _run_single_block(x.reshape(rows, cols), lo, hi, donate)
        return out.reshape(orig_shape)

    # Large & ragged: clamp the 128-aligned prefix with the tiled kernel and
    # the <128-element tail with plain jnp.clip.
    # TODO(synk): the concatenate still costs one extra output write; the real
    # fix is fusing clamp with its producer/consumer (see kernel TODO).
    flat = x.reshape(-1)
    n_main = (n_elem // _LANES) * _LANES
    main = _run_tiled(flat[:n_main].reshape(n_main // _LANES, _LANES),
                      lo, hi, donate, input_buffering)
    tail = jnp.clip(flat[n_main:], lo, hi)
    return jnp.concatenate([main.reshape(-1), tail]).reshape(orig_shape)


if __name__ == "__main__":
    key = jax.random.PRNGKey(0)
    minval, maxval = 0.0, 1.0  # typical DoReFa activation clamp range

    # Main case: NCHW conv activation (numel % 128 == 0) -> tiled Pallas path.
    x = jax.random.normal(key, (2, 4, 16, 16), dtype=jnp.float32) * 2.0
    y = jax.block_until_ready(clamper(x, minval, maxval))
    assert y.shape == x.shape and y.dtype == x.dtype
    assert jnp.allclose(y, jnp.clip(x, minval, maxval)), "mismatch (aligned)"

    # Ragged case: numel % 128 != 0 -> single full-array block, no pad/slice.
    key2 = jax.random.split(key)[0]
    x2 = jax.random.normal(key2, (3, 5, 7), dtype=jnp.float32) * 2.0
    y2 = jax.block_until_ready(clamper(x2, minval, maxval))
    assert y2.shape == x2.shape and y2.dtype == x2.dtype
    assert jnp.allclose(y2, jnp.clip(x2, minval, maxval)), "mismatch (ragged)"

    print("KERNEL_OK")
</pallas_src>

<mosaic_0001>
module attributes {stable_mosaic.version = 11 : i64} {
  func.func @_clamp_kernel(%arg0: i32, %arg1: memref<16x128xf32, #tpu.memory_space<vmem>>, %arg2: memref<16x128xf32, #tpu.memory_space<vmem>>) attributes {dimension_semantics = [#tpu.dimension_semantics<parallel>], iteration_bounds = array<i64: 1>, scalar_prefetch = 0 : i64, scratch_operands = 0 : i64, tpu.core_type = #tpu.core_type<tc>, window_params = [{transform_indices = @transform_0, window_bounds = array<i64: 16, 128>}, {transform_indices = @transform_1, window_bounds = array<i64: 16, 128>}]} {
    %c0 = arith.constant 0 : index
    %c0_0 = arith.constant 0 : index
    %0 = vector.load %arg1[%c0, %c0_0] : memref<16x128xf32, #tpu.memory_space<vmem>>, vector<16x128xf32>
    %cst = arith.constant 0.000000e+00 : f32
    %cst_1 = arith.constant 1.000000e+00 : f32
    %1 = vector.broadcast %cst : f32 to vector<16x128xf32>
    %2 = arith.maximumf %1, %0 : vector<16x128xf32>
    %3 = vector.broadcast %cst_1 : f32 to vector<16x128xf32>
    %4 = arith.minimumf %3, %2 : vector<16x128xf32>
    %c0_2 = arith.constant 0 : index
    %c0_3 = arith.constant 0 : index
    %5 = vector.load %arg2[%c0_2, %c0_3] : memref<16x128xf32, #tpu.memory_space<vmem>>, vector<16x128xf32>
    tpu.vector_store %arg2[%c0_2, %c0_3], %4 {strides = array<i32>} : memref<16x128xf32, #tpu.memory_space<vmem>>, vector<16x128xf32>,
    return
  }
  func.func @transform_0(%arg0: i32) -> (i32, i32) {
    %c0_i32 = arith.constant 0 : i32
    %c0_i32_0 = arith.constant 0 : i32
    return %arg0, %c0_i32 : i32, i32
  }
  func.func @transform_1(%arg0: i32) -> (i32, i32) {
    %c0_i32 = arith.constant 0 : i32
    %c0_i32_0 = arith.constant 0 : i32
    return %arg0, %c0_i32 : i32, i32
  }
}

</mosaic_0001>

<bundles_post_ra>
// kernel: tpu_custom_call.1
= control target key start
LH: loop header
LB: loop body
LE: loop exit
PB: predicated region body
PF: predicated region fallthrough
CT: control target
= control target key end

     0   :  { %6 = vsyncpa [#allocation3], 0  ;;  %s144_s0 = inlined_call_operand.hbm [shape: f32[16,128], index: 0, kind: input, shape index: {}]   ;;  %s145_s1 = inlined_call_operand.hbm [shape: f32[16,128], index: 1, kind: output, shape index: {}]  }
   0x1   :  { %7 = vsyncpa [#allocation4], 0  ;;  %s100_s6 = smov [#allocation2]   ;;  %s52_s10 = scalar_lea.hbm %s144_s0, 256 }
   0x2   :  { %s13_s7 = sshll.u32 %s100_s6, 4  ;;  %p53_p0 = scmp.ne.s32.totalorder %s144_s0, %s52_s10  ;;  %s14_s7 = int_to_ptr.vmem [resolvable:$true] %s13_s7 }
   0x3   :  { %p56_p1 = scmp.lt.u32.totalorder %s52_s10, %s144_s0 }
   0x5   :  { %p58_p2 = pnand %p56_p1, %p53_p0 }
   0x7   :  { %61 = shalt.err (!%p58_p2)
}
   0x8   :  { %s62_s15 = scalar_lea.vmem %s14_s7, 256  ;;  %p67_p4 = scmp.lt.s32.totalorder %s14_s7, %s14_s7 }
   0x9   :  { %p63_p3 = scmp.ne.s32.totalorder %s14_s7, %s62_s15  ;;  %p68_p5 = scmp.lt.s32.totalorder %s62_s15, %s62_s15 }
   0xb   :  { %p69_p6 = por %p68_p5, %p67_p4 }
   0xd   :  { %p70_p7 = pnand %p69_p6, %p63_p3 }
   0xf   :  { %73 = shalt.err (!%p70_p7)
}
  0x10   :  { %s101_s16 = smov 128   ;;  %s102_s17 = smov 8  }
  0x11   :  { %19 = dma.hbm_to_vmem [thread:$0]  %s144_s0, 256, %s14_s7, [#allocation3], %s101_s16, %s101_s16, %s102_s17  }
  0x12   :  { %96 = dma.done.wait [#allocation3], 256  }
  0x13   :  { %97 = vsyncadd [#allocation3], 4294967040  ;;  %v23_v0 = vld [vmem:[#allocation2] sm:$0xff]  ;;  %v24_v1 = vld [vmem:[#allocation2 + $0x8] sm:$0xff]  ;;  %s103_s20 = smov [#allocation5]  }
  0x14   :  { %s36_s21 = sshll.u32 %s103_s20, 4  ;;  %v25_v2 = vmax.f32 %v23_v0, 0.0  ;;  %v26_v3 = vmax.f32 %v24_v1, 0.0  ;;  %s37_s21 = int_to_ptr.vmem [resolvable:$true] %s36_s21 }
  0x15   :  { %s74_s22 = scalar_lea.vmem %s37_s21, 256  ;;  %p79_p9 = scmp.lt.s32.totalorder %s37_s21, %s37_s21 }
  0x16   :  { %v27_v4 = vmin.f32 %v25_v2, 1.0  ;;  %v28_v5 = vmin.f32 %v26_v3, 1.0  ;;  %p75_p8 = scmp.ne.s32.totalorder %s37_s21, %s74_s22  ;;  %p80_p10 = scmp.lt.s32.totalorder %s74_s22, %s74_s22 }
  0x18   :  { %29 = vst [vmem:[#allocation5] sm:$0xff] %v27_v4  ;;  %30 = vst [vmem:[#allocation5 + $0x8] sm:$0xff] %v28_v5  ;;  %p81_p11 = por %p80_p10, %p79_p9 }
  0x1a   :  { %p82_p12 = pnand %p81_p11, %p75_p8 }
  0x1c   :  { %85 = shalt.err (!%p82_p12)
}
  0x1d   :  { %s86_s24 = scalar_lea.hbm %s145_s1, 256 }
  0x1e   :  { %p87_p13 = scmp.ne.s32.totalorder %s145_s1, %s86_s24  ;;  %p90_p0 = scmp.lt.u32.totalorder %s86_s24, %s145_s1 }
  0x20   :  { %p92_p1 = pnand %p90_p0, %p87_p13 }
  0x22   :  { %95 = shalt.err (!%p92_p1)
}
  0x23   :  { %42 = dma.vmem_to_hbm [thread:$0]  %s37_s21, 256, %s145_s1, [#allocation4], %s101_s16, %s101_s16, %s102_s17  }
  0x24   :  { %98 = dma.done.wait [#allocation4], 256  }
  0x25   :  { %99 = vsyncadd [#allocation4], 4294967040 }
  0x26   :  { %46 = vsyncpa [#allocation3], 1 }
  0x27   :  { %47 = vsyncpa [#allocation4], 1 }

</bundles_post_ra>
